<compile_context>
chip_gen: v6e
topology: v6e:2x2x1
jax: 0.10.0
libtpu: 0.0.40
codegen_flags: <defaults>
</compile_context>

<pallas_src>
from functools import partial

import jax
import jax.numpy as jnp
from jax.experimental import pallas as pl
from jax.experimental.pallas import tpu as pltpu

_LANE = 128     # lane width (last dim)
_SUBLANE = 8    # sublane width (second-to-last dim)


def _round_up(x, m):
    return ((x + m - 1) // m) * m


# ----------------------------------------------------------------------------
# Fused kernel: the full MLP for one batch tile.
# refs = (w_0, b_0, w_1, b_1, ..., w_{depth-1}, b_{depth-1}, out_ref)
# ----------------------------------------------------------------------------
def _fused_mlp_kernel(x_ref, *refs, alpha, depth):
    out_ref = refs[-1]
    h = x_ref[...]                                   # (Bt, DinP) f32, in VMEM
    for layer in range(depth):                       # depth is static -> unrolled
        w_ref = refs[2 * layer]
        b_ref = refs[2 * layer + 1]
        # Linear: MXU matmul with f32 accumulation, then bias add (VPU).
        h = jnp.dot(h, w_ref[...], preferred_element_type=jnp.float32)
        h = h + b_ref[...]                           # (1, WP) broadcasts over rows
        # LeakyReLU(negative_slope=alpha) on the VPU.
        h = jnp.where(h >= 0.0, h, alpha * h)
    # Single lane-dense store of the final latent; intermediates never hit HBM.
    out_ref[...] = h.astype(out_ref.dtype)


# ----------------------------------------------------------------------------
# Parameter init (PyTorch-style uniform +/- 1/sqrt(fan_in)) and one-time padding.
# ----------------------------------------------------------------------------
def init_custom_network_params(key, num_states, width, depth):
    """Weights stored transposed as (in_features, out_features) so y = x @ W_t + b."""
    params = []
    for layer in range(depth):
        fan_in = num_states if layer == 0 else width
        key, kw, kb = jax.random.split(key, 3)
        bound = 1.0 / jnp.sqrt(jnp.asarray(fan_in, jnp.float32))
        w_t = jax.random.uniform(kw, (fan_in, width), jnp.float32, -bound, bound)
        b = jax.random.uniform(kb, (width,), jnp.float32, -bound, bound)
        params.append((w_t, b))
    return params


def pad_params_for_tpu(params, num_states, width, dtype=jnp.float32):
    """Zero-pad every weight/bias to lane-dense (multiple-of-128) shapes, once."""
    depth = len(params)
    din_p = _round_up(max(num_states, 1), _LANE)
    w_p = _round_up(max(width, 1), _LANE)
    in_dims = [num_states] + [width] * (depth - 1)
    in_dims_p = [din_p] + [w_p] * (depth - 1)
    padded = []
    for layer, (w_t, b) in enumerate(params):
        wp = jnp.zeros((in_dims_p[layer], w_p), dtype)
        wp = wp.at[: in_dims[layer], :width].set(w_t.astype(dtype))
        bp = jnp.zeros((1, w_p), dtype).at[0, :width].set(b.astype(dtype))
        padded.append((wp, bp))
    return padded, din_p, w_p


# ----------------------------------------------------------------------------
# Forward pass: one fused pallas_call, batch tiled on a parallel grid axis.
# ----------------------------------------------------------------------------
def custom_network_forward(features, padded_params, *, width, alpha, batch_tile=256):
    """Returns (latent_policy, latent_value); identical because layers are shared."""
    B, Din = features.shape
    depth = len(padded_params)
    din_p = padded_params[0][0].shape[0]
    w_p = padded_params[0][0].shape[1]

    # Batch tile: multiple of 8 sublanes; pad batch up to a whole number of tiles.
    bt = min(batch_tile, _round_up(B, _SUBLANE))
    bt = _round_up(bt, _SUBLANE)
    bp = _round_up(B, bt)

    # Lane-dense, zero-padded input tile (zeros in padded feature columns are
    # annihilated by the zero-padded weight rows).
    x_p = jnp.zeros((bp, din_p), jnp.float32).at[:B, :Din].set(features)

    flat_params = []
    in_specs = [pl.BlockSpec((bt, din_p), lambda i: (i, 0))]
    in_dims_p = [din_p] + [w_p] * (depth - 1)
    for layer, (wp, bpad) in enumerate(padded_params):
        flat_params += [wp, bpad]
        # Constant index_map -> weights/bias stay resident in VMEM across batch tiles.
        in_specs.append(pl.BlockSpec((in_dims_p[layer], w_p), lambda i: (0, 0)))
        in_specs.append(pl.BlockSpec((1, w_p), lambda i: (0, 0)))

    out_padded = pl.pallas_call(
        partial(_fused_mlp_kernel, alpha=alpha, depth=depth),
        out_shape=jax.ShapeDtypeStruct((bp, w_p), jnp.float32),
        grid=(bp // bt,),
        in_specs=in_specs,
        out_specs=pl.BlockSpec((bt, w_p), lambda i: (i, 0)),
        compiler_params=pltpu.CompilerParams(
            dimension_semantics=("parallel",)   # batch tiles are independent (megacore)
        ),
    )(x_p, *flat_params)

    latent = out_padded[:B, :width]
    # policy_net and value_net share the exact same nn.Linear objects in the
    # reference module, so both branches produce the same tensor.
    return latent, latent


if __name__ == "__main__":
    # Small, module-consistent shapes.
    num_states = 12
    width = 32       # latent_dim_pi == latent_dim_vf
    depth = 2        # two Linear+LeakyReLU blocks to exercise fusion/chaining
    alpha = 0.01     # LeakyReLU negative_slope
    batch = 8

    key = jax.random.PRNGKey(0)
    key, kx = jax.random.split(key)
    features = jax.random.normal(kx, (batch, num_states), jnp.float32)

    params = init_custom_network_params(key, num_states, width, depth)
    padded_params, _, _ = pad_params_for_tpu(params, num_states, width)

    latent_pi, latent_vf = custom_network_forward(
        features, padded_params, width=width, alpha=alpha
    )
    jax.block_until_ready((latent_pi, latent_vf))

    # Pure-JAX reference check (unpadded math).
    ref = features
    for (w_t, b) in params:
        ref = ref @ w_t + b
        ref = jnp.where(ref >= 0.0, ref, alpha * ref)

    assert latent_pi.shape == (batch, width)
    assert latent_vf.shape == (batch, width)
    assert jnp.allclose(latent_pi, ref, atol=1e-5, rtol=1e-5)
    assert jnp.allclose(latent_vf, ref, atol=1e-5, rtol=1e-5)

    print("KERNEL_OK")
</pallas_src>

<mosaic_0001>
module attributes {stable_mosaic.version = 11 : i64} {
  func.func @_fused_mlp_kernel(%arg0: i32, %arg1: memref<8x128xf32, #tpu.memory_space<vmem>>, %arg2: memref<128x128xf32, #tpu.memory_space<vmem>>, %arg3: memref<1x128xf32, #tpu.memory_space<vmem>>, %arg4: memref<128x128xf32, #tpu.memory_space<vmem>>, %arg5: memref<1x128xf32, #tpu.memory_space<vmem>>, %arg6: memref<8x128xf32, #tpu.memory_space<vmem>>) attributes {dimension_semantics = [#tpu.dimension_semantics<parallel>], iteration_bounds = array<i64: 1>, scalar_prefetch = 0 : i64, scratch_operands = 0 : i64, tpu.core_type = #tpu.core_type<tc>, window_params = [{transform_indices = @transform_0, window_bounds = array<i64: 8, 128>}, {pipeline_mode = #tpu.pipeline_mode<synchronous>, transform_indices = @transform_1, window_bounds = array<i64: 128, 128>}, {pipeline_mode = #tpu.pipeline_mode<synchronous>, transform_indices = @transform_2, window_bounds = array<i64: 1, 128>}, {pipeline_mode = #tpu.pipeline_mode<synchronous>, transform_indices = @transform_3, window_bounds = array<i64: 128, 128>}, {pipeline_mode = #tpu.pipeline_mode<synchronous>, transform_indices = @transform_4, window_bounds = array<i64: 1, 128>}, {transform_indices = @transform_5, window_bounds = array<i64: 8, 128>}]} {
    %c0 = arith.constant 0 : index
    %c0_0 = arith.constant 0 : index
    %0 = vector.load %arg1[%c0, %c0_0] : memref<8x128xf32, #tpu.memory_space<vmem>>, vector<8x128xf32>
    %c0_1 = arith.constant 0 : index
    %c0_2 = arith.constant 0 : index
    %1 = vector.load %arg2[%c0_1, %c0_2] : memref<128x128xf32, #tpu.memory_space<vmem>>, vector<128x128xf32>
    %cst = arith.constant dense<0.000000e+00> : vector<8x128xf32>
    %2 = tpu.matmul %0, %1, %cst {dimension_numbers = #tpu.dot_dimension_numbers<[1], [0], [0], [1], [0, 0, 1, 1], [], []>} : vector<8x128xf32>, vector<128x128xf32>, vector<8x128xf32> -> vector<8x128xf32>
    %c0_3 = arith.constant 0 : index
    %c0_4 = arith.constant 0 : index
    %3 = vector.load %arg3[%c0_3, %c0_4] : memref<1x128xf32, #tpu.memory_space<vmem>>, vector<1x128xf32>
    %4 = vector.broadcast %3 : vector<1x128xf32> to vector<8x128xf32>
    %5 = arith.addf %2, %4 : vector<8x128xf32>
    %cst_5 = arith.constant 0.000000e+00 : f32
    %6 = vector.broadcast %cst_5 : f32 to vector<8x128xf32>
    %7 = arith.cmpf oge, %5, %6 : vector<8x128xf32>
    %cst_6 = arith.constant 0.00999999977 : f32
    %8 = vector.broadcast %cst_6 : f32 to vector<8x128xf32>
    %9 = arith.mulf %8, %5 : vector<8x128xf32>
    %10 = arith.select %7, %5, %9 : vector<8x128xi1>, vector<8x128xf32>
    %c0_7 = arith.constant 0 : index
    %c0_8 = arith.constant 0 : index
    %11 = vector.load %arg4[%c0_7, %c0_8] : memref<128x128xf32, #tpu.memory_space<vmem>>, vector<128x128xf32>
    %cst_9 = arith.constant dense<0.000000e+00> : vector<8x128xf32>
    %12 = tpu.matmul %10, %11, %cst_9 {dimension_numbers = #tpu.dot_dimension_numbers<[1], [0], [0], [1], [0, 0, 1, 1], [], []>} : vector<8x128xf32>, vector<128x128xf32>, vector<8x128xf32> -> vector<8x128xf32>
    %c0_10 = arith.constant 0 : index
    %c0_11 = arith.constant 0 : index
    %13 = vector.load %arg5[%c0_10, %c0_11] : memref<1x128xf32, #tpu.memory_space<vmem>>, vector<1x128xf32>
    %14 = vector.broadcast %13 : vector<1x128xf32> to vector<8x128xf32>
    %15 = arith.addf %12, %14 : vector<8x128xf32>
    %cst_12 = arith.constant 0.000000e+00 : f32
    %16 = vector.broadcast %cst_12 : f32 to vector<8x128xf32>
    %17 = arith.cmpf oge, %15, %16 : vector<8x128xf32>
    %cst_13 = arith.constant 0.00999999977 : f32
    %18 = vector.broadcast %cst_13 : f32 to vector<8x128xf32>
    %19 = arith.mulf %18, %15 : vector<8x128xf32>
    %20 = arith.select %17, %15, %19 : vector<8x128xi1>, vector<8x128xf32>
    %c0_14 = arith.constant 0 : index
    %c0_15 = arith.constant 0 : index
    %21 = vector.load %arg6[%c0_14, %c0_15] : memref<8x128xf32, #tpu.memory_space<vmem>>, vector<8x128xf32>
    tpu.vector_store %arg6[%c0_14, %c0_15], %20 {strides = array<i32>} : memref<8x128xf32, #tpu.memory_space<vmem>>, vector<8x128xf32>,
    return
  }
  func.func @transform_0(%arg0: i32) -> (i32, i32) {
    %c0_i32 = arith.constant 0 : i32
    %c0_i32_0 = arith.constant 0 : i32
    return %arg0, %c0_i32 : i32, i32
  }
  func.func @transform_1(%arg0: i32) -> (i32, i32) {
    %c0_i32 = arith.constant 0 : i32
    %c0_i32_0 = arith.constant 0 : i32
    %c0_i32_1 = arith.constant 0 : i32
    return %c0_i32, %c0_i32_0 : i32, i32
  }
  func.func @transform_2(%arg0: i32) -> (i32, i32) {
    %c0_i32 = arith.constant 0 : i32
    %c0_i32_0 = arith.constant 0 : i32
    %c0_i32_1 = arith.constant 0 : i32
    return %c0_i32, %c0_i32_0 : i32, i32
  }
  func.func @transform_3(%arg0: i32) -> (i32, i32) {
    %c0_i32 = arith.constant 0 : i32
    %c0_i32_0 = arith.constant 0 : i32
    %c0_i32_1 = arith.constant 0 : i32
    return %c0_i32, %c0_i32_0 : i32, i32
  }
  func.func @transform_4(%arg0: i32) -> (i32, i32) {
    %c0_i32 = arith.constant 0 : i32
    %c0_i32_0 = arith.constant 0 : i32
    %c0_i32_1 = arith.constant 0 : i32
    return %c0_i32, %c0_i32_0 : i32, i32
  }
  func.func @transform_5(%arg0: i32) -> (i32, i32) {
    %c0_i32 = arith.constant 0 : i32
    %c0_i32_0 = arith.constant 0 : i32
    return %arg0, %c0_i32 : i32, i32
  }
}

</mosaic_0001>

<bundles_post_ra>
// kernel: tpu_custom_call.1
= control target key start
LH: loop header
LB: loop body
LE: loop exit
PB: predicated region body
PF: predicated region fallthrough
CT: control target
= control target key end

     0   :  { %10 = vsyncpa [#allocation3], 0  ;;  %s560_s0 = inlined_call_operand.hbm [shape: f32[8,128], index: 0, kind: input, shape index: {}]   ;;  %s561_s1 = inlined_call_operand.hbm [shape: f32[128,128], index: 1, kind: input, shape index: {}]   ;;  %s562_s2 = inlined_call_operand.vmem [shape: f32[1,128], index: 2, kind: input, shape index: {}]   ;;  %s563_s3 = inlined_call_operand.hbm [shape: f32[128,128], index: 3, kind: input, shape index: {}]   ;;  %s564_s4 = inlined_call_operand.vmem [shape: f32[1,128], index: 4, kind: input, shape index: {}]   ;;  %s565_s5 = inlined_call_operand.hbm [shape: f32[8,128], index: 5, kind: output, shape index: {}]  }
   0x1   :  { %11 = vsyncpa [#allocation6], 0 }
   0x2   :  { %12 = vsyncpa [#allocation4], 0  ;;  %s470_s18 = smov [#allocation5]  }
   0x3   :  { %s28_s19 = sshll.u32 %s470_s18, 4  ;;  %s29_s19 = int_to_ptr.vmem [resolvable:$true] %s28_s19 }
   0x4   :  { %s392_s20 = scalar_lea.vmem %s29_s19, 2048  ;;  %p397_p1 = scmp.lt.s32.totalorder %s29_s19, %s29_s19 }
   0x5   :  { %p393_p0 = scmp.ne.s32.totalorder %s29_s19, %s392_s20  ;;  %p398_p2 = scmp.lt.s32.totalorder %s392_s20, %s392_s20 }
   0x7   :  { %p399_p3 = por %p398_p2, %p397_p1 }
   0x9   :  { %p400_p4 = pnand %p399_p3, %p393_p0 }
   0xb   :  { %403 = shalt.err (!%p400_p4)
}
   0xc   :  { %s471_s21 = smov 128   ;;  %s472_s22 = smov 8  }
   0xd   :  { %34 = dma.hbm_to_vmem [thread:$0]  %s561_s1, 2048, %s29_s19, [#allocation6], %s471_s21, %s471_s21, %s472_s22  }
   0xe   :  { %s473_s25 = smov [#allocation2]   ;;  %s474_s27 = smov [#allocation7]  }
   0xf   :  { %s19_s26 = sshll.u32 %s473_s25, 4  ;;  %s42_s28 = sshll.u32 %s474_s27, 4  ;;  %s20_s26 = int_to_ptr.vmem [resolvable:$true] %s19_s26  ;;  %s43_s28 = int_to_ptr.vmem [resolvable:$true] %s42_s28 }
  0x10   :  { %s412_s29 = scalar_lea.vmem %s20_s26, 128  ;;  %p417_p6 = scmp.lt.s32.totalorder %s20_s26, %s20_s26 }
  0x11   :  { %p413_p5 = scmp.ne.s32.totalorder %s20_s26, %s412_s29  ;;  %p418_p7 = scmp.lt.s32.totalorder %s412_s29, %s412_s29 }
  0x13   :  { %p419_p8 = por %p418_p7, %p417_p6 }
  0x15   :  { %p420_p9 = pnand %p419_p8, %p413_p5 }
  0x17   :  { %423 = shalt.err (!%p420_p9)
}
  0x18   :  { %22 = dma.hbm_to_vmem [thread:$0]  %s560_s0, 128, %s20_s26, [#allocation3]  }
  0x19   :  { %s432_s7 = scalar_lea.vmem %s43_s28, 2048  ;;  %p437_p11 = scmp.lt.s32.totalorder %s43_s28, %s43_s28 }
  0x1a   :  { %p433_p10 = scmp.ne.s32.totalorder %s43_s28, %s432_s7  ;;  %p438_p12 = scmp.lt.s32.totalorder %s432_s7, %s432_s7 }
  0x1c   :  { %p439_p13 = por %p438_p12, %p437_p11 }
  0x1e   :  { %p440_p0 = pnand %p439_p13, %p433_p10 }
  0x20   :  { %443 = shalt.err (!%p440_p0)
}
  0x21   :  { %48 = dma.hbm_to_vmem [thread:$0]  %s563_s3, 2048, %s43_s28, [#allocation6], %s471_s21, %s471_s21, %s472_s22  }
  0x22   :  { %464 = dma.done.wait [#allocation3], 128  }
  0x23   :  { %465 = vsyncadd [#allocation3], 4294967168 }
  0x24   :  { %466 = dma.done.wait [#allocation6], 4096  }
  0x25   :  { %467 = vsyncadd [#allocation6], 4294963200  ;;  %v475_v0 = vmov 0.0   ;;  %vm476_vm0 = vmmov 0   ;;  %v76_v1 = vld [vmem:[#allocation5 + $0x78] sm:$0xff]  ;;  %v75_v2 = vld [vmem:[#allocation5 + $0x70] sm:$0xff] }
  0x26   :  { %306 = vmatprep.subr.mxu0 %v475_v0  ;;  %338 = vmatprep.mubr.msk.f32.mxu0 %vm476_vm0, %v475_v0  ;;  %v74_v3 = vld [vmem:[#allocation5 + $0x68] sm:$0xff]  ;;  %v73_v4 = vld [vmem:[#allocation5 + $0x60] sm:$0xff]  ;;  %v172_v5 = vld [vmem:[#allocation7 + $0x78] sm:$0xff]  ;;  %s477_s11 = smov [#allocation8]  }
  0x27   :  { %341 = vmatprep.subr.mxu1 %v475_v0  ;;  %373 = vmatprep.mubr.msk.f32.mxu1 %vm476_vm0, %v475_v0  ;;  %v72_v6 = vld [vmem:[#allocation5 + $0x58] sm:$0xff]  ;;  %v171_v7 = vld [vmem:[#allocation7 + $0x70] sm:$0xff]  ;;  %v170_v8 = vld [vmem:[#allocation7 + $0x68] sm:$0xff]  ;;  %s260_s12 = sshll.u32 %s477_s11, 4  ;;  %s261_s12 = int_to_ptr.vmem [resolvable:$true] %s260_s12 }
  0x28   :  { %307 = vmatpush3.msra.mxu0 %v76_v1  ;;  %342 = vmatpush3.msra.mxu1 %v172_v5  ;;  %v71_v9 = vld [vmem:[#allocation5 + $0x50] sm:$0xff]  ;;  %v169_v10 = vld [vmem:[#allocation7 + $0x60] sm:$0xff]  ;;  %v70_v11 = vld [vmem:[#allocation5 + $0x48] sm:$0xff]  ;;  %p449_p2 = scmp.lt.s32.totalorder %s261_s12, %s261_s12 }
  0x29   :  { %308 = vmatprep.subr.mxu0 %v475_v0  ;;  %343 = vmatprep.subr.mxu1 %v475_v0  ;;  %v168_v12 = vld [vmem:[#allocation7 + $0x58] sm:$0xff]  ;;  %v69_v13 = vld [vmem:[#allocation5 + $0x40] sm:$0xff]  ;;  %v167_v14 = vld [vmem:[#allocation7 + $0x50] sm:$0xff] }
  0x2a   :  { %309 = vmatpush3.msra.mxu0 %v75_v2  ;;  %344 = vmatpush3.msra.mxu1 %v171_v7  ;;  %v68_v15 = vld [vmem:[#allocation5 + $0x38] sm:$0xff]  ;;  %v166_v16 = vld [vmem:[#allocation7 + $0x48] sm:$0xff]  ;;  %v67_v17 = vld [vmem:[#allocation5 + $0x30] sm:$0xff] }
  0x2b   :  { %310 = vmatprep.subr.mxu0 %v475_v0  ;;  %345 = vmatprep.subr.mxu1 %v475_v0  ;;  %v165_v18 = vld [vmem:[#allocation7 + $0x40] sm:$0xff]  ;;  %v66_v19 = vld [vmem:[#allocation5 + $0x28] sm:$0xff]  ;;  %v164_v20 = vld [vmem:[#allocation7 + $0x38] sm:$0xff] }
  0x2c   :  { %311 = vmatpush3.msra.mxu0 %v74_v3  ;;  %346 = vmatpush3.msra.mxu1 %v170_v8  ;;  %v65_v21 = vld [vmem:[#allocation5 + $0x20] sm:$0xff]  ;;  %v163_v22 = vld [vmem:[#allocation7 + $0x30] sm:$0xff]  ;;  %v64_v23 = vld [vmem:[#allocation5 + $0x18] sm:$0xff] }
  0x2d   :  { %312 = vmatprep.subr.mxu0 %v475_v0  ;;  %347 = vmatprep.subr.mxu1 %v475_v0  ;;  %v162_v24 = vld [vmem:[#allocation7 + $0x28] sm:$0xff]  ;;  %v63_v25 = vld [vmem:[#allocation5 + $0x10] sm:$0xff]  ;;  %v161_v26 = vld [vmem:[#allocation7 + $0x20] sm:$0xff] }
  0x2e   :  { %313 = vmatpush3.msra.mxu0 %v73_v4  ;;  %348 = vmatpush3.msra.mxu1 %v169_v10  ;;  %v62_v27 = vld [vmem:[#allocation5 + $0x8] sm:$0xff]  ;;  %v160_v28 = vld [vmem:[#allocation7 + $0x18] sm:$0xff]  ;;  %v61_v29 = vld [vmem:[#allocation5] sm:$0xff] }
  0x2f   :  { %314 = vmatprep.subr.mxu0 %v475_v0  ;;  %349 = vmatprep.subr.mxu1 %v475_v0  ;;  %v60_v30 = vld [vmem:[#allocation2] sm:$0xff]  ;;  %v159_v31 = vld [vmem:[#allocation7 + $0x10] sm:$0xff]  ;;  %v158_v32 = vld [vmem:[#allocation7 + $0x8] sm:$0xff] }
  0x30   :  { %315 = vmatpush3.msra.mxu0 %v72_v6  ;;  %350 = vmatpush3.msra.mxu1 %v168_v12  ;;  %v157_v33 = vld [vmem:[#allocation7] sm:$0xff]  ;;  %v270_v34 = vld [vmem:[%s562_s2] ss:$0 sm:$0xff]  ;;  %s444_s2 = scalar_lea.vmem %s261_s12, 128 }
  0x31   :  { %316 = vmatprep.subr.mxu0 %v475_v0  ;;  %351 = vmatprep.subr.mxu1 %v475_v0  ;;  %v271_v40 = vld [vmem:[%s564_s4] ss:$0 sm:$0xff]  ;;  %p445_p1 = scmp.ne.s32.totalorder %s261_s12, %s444_s2  ;;  %p450_p3 = scmp.lt.s32.totalorder %s444_s2, %s444_s2 }
  0x32   :  { %317 = vmatpush3.msra.mxu0 %v71_v9  ;;  %352 = vmatpush3.msra.mxu1 %v167_v14 }
  0x33   :  { %318 = vmatprep.subr.mxu0 %v475_v0  ;;  %353 = vmatprep.subr.mxu1 %v475_v0  ;;  %p451_p4 = por %p450_p3, %p449_p2 }
  0x34   :  { %319 = vmatpush3.msra.mxu0 %v70_v11  ;;  %354 = vmatpush3.msra.mxu1 %v166_v16 }
  0x35   :  { %320 = vmatprep.subr.mxu0 %v475_v0  ;;  %355 = vmatprep.subr.mxu1 %v475_v0  ;;  %p452_p5 = pnand %p451_p4, %p445_p1 }
  0x36   :  { %321 = vmatpush3.msra.mxu0 %v69_v13  ;;  %356 = vmatpush3.msra.mxu1 %v165_v18 }
  0x37   :  { %322 = vmatprep.subr.mxu0 %v475_v0  ;;  %357 = vmatprep.subr.mxu1 %v475_v0 }
  0x38   :  { %323 = vmatpush3.msra.mxu0 %v68_v15  ;;  %358 = vmatpush3.msra.mxu1 %v164_v20 }
  0x39   :  { %324 = vmatprep.subr.mxu0 %v475_v0  ;;  %359 = vmatprep.subr.mxu1 %v475_v0 }
  0x3a   :  { %325 = vmatpush3.msra.mxu0 %v67_v17  ;;  %360 = vmatpush3.msra.mxu1 %v163_v22 }
  0x3b   :  { %326 = vmatprep.subr.mxu0 %v475_v0  ;;  %361 = vmatprep.subr.mxu1 %v475_v0 }
  0x3c   :  { %327 = vmatpush3.msra.mxu0 %v66_v19  ;;  %362 = vmatpush3.msra.mxu1 %v162_v24 }
  0x3d   :  { %328 = vmatprep.subr.mxu0 %v475_v0  ;;  %363 = vmatprep.subr.mxu1 %v475_v0 }
  0x3e   :  { %329 = vmatpush3.msra.mxu0 %v65_v21  ;;  %364 = vmatpush3.msra.mxu1 %v161_v26 }
  0x3f   :  { %330 = vmatprep.subr.mxu0 %v475_v0  ;;  %365 = vmatprep.subr.mxu1 %v475_v0 }
  0x40   :  { %331 = vmatpush3.msra.mxu0 %v64_v23  ;;  %366 = vmatpush3.msra.mxu1 %v160_v28 }
  0x41   :  { %332 = vmatprep.subr.mxu0 %v475_v0  ;;  %367 = vmatprep.subr.mxu1 %v475_v0 }
  0x42   :  { %333 = vmatpush3.msra.mxu0 %v63_v25  ;;  %368 = vmatpush3.msra.mxu1 %v159_v31 }
  0x43   :  { %334 = vmatprep.subr.mxu0 %v475_v0  ;;  %369 = vmatprep.subr.mxu1 %v475_v0 }
  0x44   :  { %335 = vmatpush3.msra.mxu0 %v62_v27  ;;  %370 = vmatpush3.msra.mxu1 %v158_v32 }
  0x45   :  { %336 = vmatprep.subr.mxu0 %v475_v0  ;;  %371 = vmatprep.subr.mxu1 %v475_v0 }
  0x46   :  { %337 = vmatpush3.msra.mxu0 %v61_v29  ;;  %372 = vmatpush3.msra.mxu1 %v157_v33 }
  0x47   :  { %339 = vmatmul.mubr.f32.vlgmr.msra.gmra.mxu0 %v60_v30 }
 0x107   :  { %v150_v35 = vpop.f32.mrf.mxu0 }
 0x108   :  { %v151_v36 = vadd.f32 %v270_v34, %v150_v35 }
 0x109   :  { %v340_v37 = vpop.f32.mrf.mxu0 }
 0x10a   :  { %v155_v38 = vmul.f32 0.01, %v151_v36  ;;  %vm154_vm1 = vcmp.ge.f32.partialorder %v151_v36, 0.0 }
 0x10c   :  { %v156_v39 = vsel %vm154_vm1, %v151_v36, %v155_v38 }
 0x10d   :  { %374 = vmatmul.mubr.f32.vlgmr.msra.gmra.mxu1 %v156_v39 }
 0x1cd   :  { %v246_v41 = vpop.f32.mrf.mxu1 }
 0x1ce   :  { %v247_v42 = vadd.f32 %v271_v40, %v246_v41 }
 0x1cf   :  { %v375_v43 = vpop.f32.mrf.mxu1 }
 0x1d0   :  { %v251_v44 = vmul.f32 0.01, %v247_v42  ;;  %vm250_vm2 = vcmp.ge.f32.partialorder %v247_v42, 0.0 }
 0x1d2   :  { %v252_v45 = vsel %vm250_vm2, %v247_v42, %v251_v44 }
 0x1d3   :  { %253 = vst [vmem:[#allocation8] sm:$0xff] %v252_v45 }
 0x1d4   :  { %455 = shalt.err (!%p452_p5)
}
 0x1d5   :  { %263 = dma.vmem_to_hbm [thread:$0]  %s261_s12, 128, %s565_s5, [#allocation4]  }
 0x1d6   :  { %468 = dma.done.wait [#allocation4], 128  }
 0x1d7   :  { %469 = vsyncadd [#allocation4], 4294967168 }
 0x1d8   :  { %267 = vsyncpa [#allocation3], 1 }
 0x1d9   :  { %268 = vsyncpa [#allocation6], 1 }
 0x1da   :  { %269 = vsyncpa [#allocation4], 1 }

</bundles_post_ra>
